<compile_context>
chip_gen: v7x
topology: tpu7x:2x2x1
jax: 0.10.0
libtpu: 0.0.40
codegen_flags: <defaults>
</compile_context>

<pallas_src>
import functools

import jax
import jax.numpy as jnp
from jax.experimental import pallas as pl
from jax.experimental.pallas import tpu as pltpu


def _round_up(n, m):
    return ((n + m - 1) // m) * m


def score_loss_kernel(x_ref, w1t_ref, b1_ref, w2t_ref, b2_ref, w3t_ref, b3_ref, k_ref,
                      out_ref, *, batch, tile_b):
    i = pl.program_id(0)

    x = x_ref[...]                          # (TB, D)
    w1t = w1t_ref[...]; b1 = b1_ref[...]    # (D, H1), (1, H1)
    w2t = w2t_ref[...]; b2 = b2_ref[...]    # (H1, H2), (1, H2)
    w3t = w3t_ref[...]; b3 = b3_ref[...]    # (H2, D), (1, D)
    K = k_ref[...]                          # (H2, H1): K[q,p] = W2[q,p] * (W1 @ W3)[p,q]

    # ---- MLP forward (score net), no in-kernel transposes ----
    z1 = jnp.dot(x, w1t, preferred_element_type=jnp.float32) + b1
    a1 = jnp.tanh(z1)                                               # (TB, H1)
    z2 = jnp.dot(a1, w2t, preferred_element_type=jnp.float32) + b2
    a2 = jnp.tanh(z2)                                               # (TB, H2)
    score = jnp.dot(a2, w3t, preferred_element_type=jnp.float32) + b3  # (TB, D)

    # tanh'(z) = 1 - tanh(z)^2
    d1 = 1.0 - a1 * a1                                              # (TB, H1)
    d2 = 1.0 - a2 * a2                                              # (TB, H2)

    # ---- exact Jacobian trace (weight-only K precomputed in the wrapper) ----
    # tr(W3 D2 W2 D1 W1) = sum_p d1[p] * (d2 @ K)[p]
    T2 = jnp.dot(d2, K, preferred_element_type=jnp.float32)         # (TB, H1)
    trace_rows = jnp.sum(d1 * T2, axis=1, keepdims=True)            # (TB, 1)
    sq_rows = jnp.sum(score * score, axis=1, keepdims=True)         # (TB, 1)

    # mask rows that are batch padding
    row_idx = i * tile_b + jax.lax.broadcasted_iota(jnp.int32, (tile_b, 1), 0)
    valid = (row_idx < batch).astype(jnp.float32)
    part_sq = jnp.sum(sq_rows * valid)
    part_tr = jnp.sum(trace_rows * valid)

    # lane-dense per-tile partials: lane 0 = sum||score||^2, lane 1 = sum trace
    lane = jax.lax.broadcasted_iota(jnp.int32, (1, 1, 128), 2)
    out_ref[...] = jnp.where(lane == 0, part_sq,
                             jnp.where(lane == 1, part_tr, 0.0))


def score_based_matching_loss(x, params, *, tile_b=None):
    w1, b1, w2, b2, w3, b3 = params
    B, D = x.shape
    H1 = w1.shape[0]
    H2 = w2.shape[0]

    # batch tile: multiple of 8 sublanes, capped so 2x double-buffered x stays small in VMEM
    if tile_b is None:
        tile_b = min(512, _round_up(B, 8))
    tile_b = max(8, _round_up(tile_b, 8))

    Bp = _round_up(B, tile_b)
    if Bp != B:
        x = jnp.pad(x, ((0, Bp - B), (0, 0)))
    num_tiles = Bp // tile_b

    # one-time layout plumbing + weight-only precompute (outside the per-tile body)
    w1t = w1.T                                   # (D, H1)
    w2t = w2.T                                   # (H1, H2)
    w3t = w3.T                                   # (H2, D)
    K = w2 * jnp.dot(w3t, w1t)                   # (H2, H1): W2[q,p] * (W1 @ W3)[p,q]

    kernel = functools.partial(score_loss_kernel, batch=B, tile_b=tile_b)

    # advisory cost estimate for XLA scheduling around the custom call
    flops = 2 * Bp * (D * H1 + H1 * H2 + H2 * D + H2 * H1)
    weight_bytes = 4 * (D * H1 + H1 * H2 + H2 * D + H2 * H1 + H1 + H2 + D)
    cost = pl.CostEstimate(
        flops=flops,
        transcendentals=Bp * (H1 + H2),
        bytes_accessed=4 * Bp * D + weight_bytes + 4 * num_tiles * 128,
    )

    # explicit VMEM budget: double-buffered x tile + pinned weights + live activations
    vmem_bytes = 4 * (2 * tile_b * D + tile_b * 2 * (H1 + H2 + D)) + 2 * weight_bytes + (1 << 20)
    vmem_bytes = int(min(max(vmem_bytes, 4 << 20), 32 << 20))

    pin2 = lambda s: pl.BlockSpec(s, lambda i: (0, 0))

    out = pl.pallas_call(
        kernel,
        out_shape=jax.ShapeDtypeStruct((num_tiles, 1, 128), jnp.float32),
        grid=(num_tiles,),
        in_specs=[
            pl.BlockSpec((tile_b, D), lambda i: (i, 0)),   # x: streamed / double-buffered
            pin2((D, H1)), pin2((1, H1)),                  # w1t, b1 (pinned)
            pin2((H1, H2)), pin2((1, H2)),                 # w2t, b2
            pin2((H2, D)), pin2((1, D)),                   # w3t, b3
            pin2((H2, H1)),                                # K
        ],
        out_specs=pl.BlockSpec((1, 1, 128), lambda i: (i, 0, 0)),
        compiler_params=pltpu.CompilerParams(
            dimension_semantics=("parallel",),             # independent tiles -> both TCs on v7x
            vmem_limit_bytes=vmem_bytes,
        ),
        cost_estimate=cost,
    )(x, w1t, b1, w2t, b2, w3t, b3, K)

    # tiny final reduction in the wrapper (partials -> means -> combined loss)
    sum_sq = jnp.sum(out[:, 0, 0])
    sum_tr = jnp.sum(out[:, 0, 1])
    return sum_sq / B + 2.0 * (sum_tr / B)


# ---------------- pure-JAX reference (for correctness check) ----------------
def _mlp(params, x):
    w1, b1, w2, b2, w3, b3 = params
    a1 = jnp.tanh(x @ w1.T + b1[0])
    a2 = jnp.tanh(a1 @ w2.T + b2[0])
    return a2 @ w3.T + b3[0]


def _ref_loss(params, x):
    score = _mlp(params, x)
    jac = jax.vmap(jax.jacrev(lambda xi: _mlp(params, xi[None, :])[0]))(x)  # (B, D, D)
    tr = jnp.trace(jac, axis1=1, axis2=2)
    return jnp.mean(jnp.sum(score ** 2, axis=1)) + 2.0 * jnp.mean(tr)


if __name__ == "__main__":
    B, D, H1, H2 = 8, 16, 32, 32

    key = jax.random.PRNGKey(0)
    kx, k1, k2, k3, kb1, kb2, kb3 = jax.random.split(key, 7)

    x = jax.random.normal(kx, (B, D), dtype=jnp.float32)

    # Deterministic synthetic parameters (PyTorch nn.Linear shapes: (out, in)).
    w1 = jax.random.normal(k1, (H1, D), dtype=jnp.float32) / jnp.sqrt(D)
    b1 = jax.random.normal(kb1, (1, H1), dtype=jnp.float32) * 0.1
    w2 = jax.random.normal(k2, (H2, H1), dtype=jnp.float32) / jnp.sqrt(H1)
    b2 = jax.random.normal(kb2, (1, H2), dtype=jnp.float32) * 0.1
    w3 = jax.random.normal(k3, (D, H2), dtype=jnp.float32) / jnp.sqrt(H2)
    b3 = jax.random.normal(kb3, (1, D), dtype=jnp.float32) * 0.1
    params = (w1, b1, w2, b2, w3, b3)

    loss = jax.block_until_ready(score_based_matching_loss(x, params))
    ref = jax.block_until_ready(_ref_loss(params, x))

    assert jnp.isfinite(loss), "kernel produced non-finite loss"
    assert jnp.allclose(loss, ref, rtol=1e-4, atol=1e-4), (loss, ref)
    print("KERNEL_OK")
</pallas_src>

<mosaic_0001>
module attributes {stable_mosaic.version = 11 : i64} {
  func.func @score_loss_kernel(%arg0: i32, %arg1: memref<8x16xf32, #tpu.memory_space<vmem>>, %arg2: memref<16x32xf32, #tpu.memory_space<vmem>>, %arg3: memref<1x32xf32, #tpu.memory_space<vmem>>, %arg4: memref<32x32xf32, #tpu.memory_space<vmem>>, %arg5: memref<1x32xf32, #tpu.memory_space<vmem>>, %arg6: memref<32x16xf32, #tpu.memory_space<vmem>>, %arg7: memref<1x16xf32, #tpu.memory_space<vmem>>, %arg8: memref<32x32xf32, #tpu.memory_space<vmem>>, %arg9: memref<1x1x128xf32, #tpu.memory_space<vmem>>) attributes {dimension_semantics = [#tpu.dimension_semantics<parallel>], iteration_bounds = array<i64: 1>, scalar_prefetch = 0 : i64, scratch_operands = 0 : i64, tpu.core_type = #tpu.core_type<tc>, window_params = [{transform_indices = @transform_0, window_bounds = array<i64: 8, 16>}, {pipeline_mode = #tpu.pipeline_mode<synchronous>, transform_indices = @transform_1, window_bounds = array<i64: 16, 32>}, {pipeline_mode = #tpu.pipeline_mode<synchronous>, transform_indices = @transform_2, window_bounds = array<i64: 1, 32>}, {pipeline_mode = #tpu.pipeline_mode<synchronous>, transform_indices = @transform_3, window_bounds = array<i64: 32, 32>}, {pipeline_mode = #tpu.pipeline_mode<synchronous>, transform_indices = @transform_4, window_bounds = array<i64: 1, 32>}, {pipeline_mode = #tpu.pipeline_mode<synchronous>, transform_indices = @transform_5, window_bounds = array<i64: 32, 16>}, {pipeline_mode = #tpu.pipeline_mode<synchronous>, transform_indices = @transform_6, window_bounds = array<i64: 1, 16>}, {pipeline_mode = #tpu.pipeline_mode<synchronous>, transform_indices = @transform_7, window_bounds = array<i64: 32, 32>}, {transform_indices = @transform_8, window_bounds = array<i64: 1, 1, 128>}]} {
    %c0 = arith.constant 0 : index
    %c0_0 = arith.constant 0 : index
    %0 = vector.load %arg1[%c0, %c0_0] : memref<8x16xf32, #tpu.memory_space<vmem>>, vector<8x16xf32>
    %c0_1 = arith.constant 0 : index
    %c0_2 = arith.constant 0 : index
    %1 = vector.load %arg2[%c0_1, %c0_2] : memref<16x32xf32, #tpu.memory_space<vmem>>, vector<16x32xf32>
    %c0_3 = arith.constant 0 : index
    %c0_4 = arith.constant 0 : index
    %2 = vector.load %arg3[%c0_3, %c0_4] : memref<1x32xf32, #tpu.memory_space<vmem>>, vector<1x32xf32>
    %c0_5 = arith.constant 0 : index
    %c0_6 = arith.constant 0 : index
    %3 = vector.load %arg4[%c0_5, %c0_6] : memref<32x32xf32, #tpu.memory_space<vmem>>, vector<32x32xf32>
    %c0_7 = arith.constant 0 : index
    %c0_8 = arith.constant 0 : index
    %4 = vector.load %arg5[%c0_7, %c0_8] : memref<1x32xf32, #tpu.memory_space<vmem>>, vector<1x32xf32>
    %c0_9 = arith.constant 0 : index
    %c0_10 = arith.constant 0 : index
    %5 = vector.load %arg6[%c0_9, %c0_10] : memref<32x16xf32, #tpu.memory_space<vmem>>, vector<32x16xf32>
    %c0_11 = arith.constant 0 : index
    %c0_12 = arith.constant 0 : index
    %6 = vector.load %arg7[%c0_11, %c0_12] : memref<1x16xf32, #tpu.memory_space<vmem>>, vector<1x16xf32>
    %c0_13 = arith.constant 0 : index
    %c0_14 = arith.constant 0 : index
    %7 = vector.load %arg8[%c0_13, %c0_14] : memref<32x32xf32, #tpu.memory_space<vmem>>, vector<32x32xf32>
    %cst = arith.constant dense<0.000000e+00> : vector<8x32xf32>
    %8 = tpu.matmul %0, %1, %cst {dimension_numbers = #tpu.dot_dimension_numbers<[1], [0], [0], [1], [0, 0, 1, 1], [], []>} : vector<8x16xf32>, vector<16x32xf32>, vector<8x32xf32> -> vector<8x32xf32>
    %9 = vector.broadcast %2 : vector<1x32xf32> to vector<8x32xf32>
    %10 = arith.addf %8, %9 : vector<8x32xf32>
    %11 = math.tanh %10 : vector<8x32xf32>
    %cst_15 = arith.constant dense<0.000000e+00> : vector<8x32xf32>
    %12 = tpu.matmul %11, %3, %cst_15 {dimension_numbers = #tpu.dot_dimension_numbers<[1], [0], [0], [1], [0, 0, 1, 1], [], []>} : vector<8x32xf32>, vector<32x32xf32>, vector<8x32xf32> -> vector<8x32xf32>
    %13 = vector.broadcast %4 : vector<1x32xf32> to vector<8x32xf32>
    %14 = arith.addf %12, %13 : vector<8x32xf32>
    %15 = math.tanh %14 : vector<8x32xf32>
    %cst_16 = arith.constant dense<0.000000e+00> : vector<8x16xf32>
    %16 = tpu.matmul %15, %5, %cst_16 {dimension_numbers = #tpu.dot_dimension_numbers<[1], [0], [0], [1], [0, 0, 1, 1], [], []>} : vector<8x32xf32>, vector<32x16xf32>, vector<8x16xf32> -> vector<8x16xf32>
    %17 = vector.broadcast %6 : vector<1x16xf32> to vector<8x16xf32>
    %18 = arith.addf %16, %17 : vector<8x16xf32>
    %19 = arith.mulf %11, %11 : vector<8x32xf32>
    %cst_17 = arith.constant 1.000000e+00 : f32
    %20 = vector.broadcast %cst_17 : f32 to vector<8x32xf32>
    %21 = arith.subf %20, %19 : vector<8x32xf32>
    %22 = arith.mulf %15, %15 : vector<8x32xf32>
    %cst_18 = arith.constant 1.000000e+00 : f32
    %23 = vector.broadcast %cst_18 : f32 to vector<8x32xf32>
    %24 = arith.subf %23, %22 : vector<8x32xf32>
    %cst_19 = arith.constant dense<0.000000e+00> : vector<8x32xf32>
    %25 = tpu.matmul %24, %7, %cst_19 {dimension_numbers = #tpu.dot_dimension_numbers<[1], [0], [0], [1], [0, 0, 1, 1], [], []>} : vector<8x32xf32>, vector<32x32xf32>, vector<8x32xf32> -> vector<8x32xf32>
    %26 = arith.mulf %21, %25 : vector<8x32xf32>
    %cst_20 = arith.constant dense<0.000000e+00> : vector<8xf32>
    %27 = vector.multi_reduction <add>, %26, %cst_20 [1] : vector<8x32xf32> to vector<8xf32>
    %28 = vector.shape_cast %27 : vector<8xf32> to vector<8x1xf32>
    %29 = arith.mulf %18, %18 : vector<8x16xf32>
    %cst_21 = arith.constant dense<0.000000e+00> : vector<8xf32>
    %30 = vector.multi_reduction <add>, %29, %cst_21 [1] : vector<8x16xf32> to vector<8xf32>
    %31 = vector.shape_cast %30 : vector<8xf32> to vector<8x1xf32>
    %c8_i32 = arith.constant 8 : i32
    %32 = arith.muli %arg0, %c8_i32 : i32
    %33 = tpu.iota {dimensions = array<i32: 0>} : vector<8x1xi32>
    %34 = vector.broadcast %32 : i32 to vector<8x1xi32>
    %35 = arith.addi %34, %33 : vector<8x1xi32>
    %c8_i32_22 = arith.constant 8 : i32
    %36 = vector.broadcast %c8_i32_22 : i32 to vector<8x1xi32>
    %37 = arith.cmpi slt, %35, %36 : vector<8x1xi32>
    %38 = arith.extui %37 : vector<8x1xi1> to vector<8x1xi32>
    %39 = arith.sitofp %38 : vector<8x1xi32> to vector<8x1xf32>
    %40 = arith.mulf %31, %39 : vector<8x1xf32>
    %41 = vector.shape_cast %40 : vector<8x1xf32> to vector<1x8x1xf32>
    %cst_23 = arith.constant dense<0.000000e+00> : vector<1xf32>
    %42 = vector.multi_reduction <add>, %41, %cst_23 [1, 2] : vector<1x8x1xf32> to vector<1xf32>
    %43 = vector.shape_cast %42 : vector<1xf32> to vector<1x1x1xf32>
    %44 = vector.extract %43[0, 0, 0] : f32 from vector<1x1x1xf32>
    %45 = arith.mulf %28, %39 : vector<8x1xf32>
    %46 = vector.shape_cast %45 : vector<8x1xf32> to vector<1x8x1xf32>
    %cst_24 = arith.constant dense<0.000000e+00> : vector<1xf32>
    %47 = vector.multi_reduction <add>, %46, %cst_24 [1, 2] : vector<1x8x1xf32> to vector<1xf32>
    %48 = vector.shape_cast %47 : vector<1xf32> to vector<1x1x1xf32>
    %49 = vector.extract %48[0, 0, 0] : f32 from vector<1x1x1xf32>
    %50 = tpu.iota {dimensions = array<i32: 2>} : vector<1x1x128xi32>
    %c0_i32 = arith.constant 0 : i32
    %51 = vector.broadcast %c0_i32 : i32 to vector<1x1x128xi32>
    %52 = arith.cmpi eq, %50, %51 : vector<1x1x128xi32>
    %c1_i32 = arith.constant 1 : i32
    %53 = vector.broadcast %c1_i32 : i32 to vector<1x1x128xi32>
    %54 = arith.cmpi eq, %50, %53 : vector<1x1x128xi32>
    %cst_25 = arith.constant 0.000000e+00 : f32
    %55 = vector.broadcast %49 : f32 to vector<1x1x128xf32>
    %56 = vector.broadcast %cst_25 : f32 to vector<1x1x128xf32>
    %57 = arith.select %54, %55, %56 : vector<1x1x128xi1>, vector<1x1x128xf32>
    %58 = vector.broadcast %44 : f32 to vector<1x1x128xf32>
    %59 = arith.select %52, %58, %57 : vector<1x1x128xi1>, vector<1x1x128xf32>
    %c0_26 = arith.constant 0 : index
    %c0_27 = arith.constant 0 : index
    %c0_28 = arith.constant 0 : index
    %60 = vector.load %arg9[%c0_26, %c0_27, %c0_28] : memref<1x1x128xf32, #tpu.memory_space<vmem>>, vector<1x1x128xf32>
    tpu.vector_store %arg9[%c0_26, %c0_27, %c0_28], %59 {strides = array<i32>} : memref<1x1x128xf32, #tpu.memory_space<vmem>>, vector<1x1x128xf32>,
    return
  }
  func.func @transform_0(%arg0: i32) -> (i32, i32) {
    %c0_i32 = arith.constant 0 : i32
    %c0_i32_0 = arith.constant 0 : i32
    return %arg0, %c0_i32 : i32, i32
  }
  func.func @transform_1(%arg0: i32) -> (i32, i32) {
    %c0_i32 = arith.constant 0 : i32
    %c0_i32_0 = arith.constant 0 : i32
    %c0_i32_1 = arith.constant 0 : i32
    return %c0_i32, %c0_i32_0 : i32, i32
  }
  func.func @transform_2(%arg0: i32) -> (i32, i32) {
    %c0_i32 = arith.constant 0 : i32
    %c0_i32_0 = arith.constant 0 : i32
    %c0_i32_1 = arith.constant 0 : i32
    return %c0_i32, %c0_i32_0 : i32, i32
  }
  func.func @transform_3(%arg0: i32) -> (i32, i32) {
    %c0_i32 = arith.constant 0 : i32
    %c0_i32_0 = arith.constant 0 : i32
    %c0_i32_1 = arith.constant 0 : i32
    return %c0_i32, %c0_i32_0 : i32, i32
  }
  func.func @transform_4(%arg0: i32) -> (i32, i32) {
    %c0_i32 = arith.constant 0 : i32
    %c0_i32_0 = arith.constant 0 : i32
    %c0_i32_1 = arith.constant 0 : i32
    return %c0_i32, %c0_i32_0 : i32, i32
  }
  func.func @transform_5(%arg0: i32) -> (i32, i32) {
    %c0_i32 = arith.constant 0 : i32
    %c0_i32_0 = arith.constant 0 : i32
    %c0_i32_1 = arith.constant 0 : i32
    return %c0_i32, %c0_i32_0 : i32, i32
  }
  func.func @transform_6(%arg0: i32) -> (i32, i32) {
    %c0_i32 = arith.constant 0 : i32
    %c0_i32_0 = arith.constant 0 : i32
    %c0_i32_1 = arith.constant 0 : i32
    return %c0_i32, %c0_i32_0 : i32, i32
  }
  func.func @transform_7(%arg0: i32) -> (i32, i32) {
    %c0_i32 = arith.constant 0 : i32
    %c0_i32_0 = arith.constant 0 : i32
    %c0_i32_1 = arith.constant 0 : i32
    return %c0_i32, %c0_i32_0 : i32, i32
  }
  func.func @transform_8(%arg0: i32) -> (i32, i32, i32) {
    %c0_i32 = arith.constant 0 : i32
    %c0_i32_0 = arith.constant 0 : i32
    %c0_i32_1 = arith.constant 0 : i32
    return %arg0, %c0_i32, %c0_i32_0 : i32, i32, i32
  }
}

</mosaic_0001>

<bundles_post_ra>
// kernel: tpu_custom_call.1
= control target key start
LH: loop header
LB: loop body
LE: loop exit
PB: predicated region body
PF: predicated region fallthrough
CT: control target
= control target key end

     0   :  { %13 = vsyncpa [#allocation3], 0  ;;  %s781_s0 = inlined_call_operand.hbm [shape: f32[8,16], index: 0, kind: input, shape index: {}]   ;;  %s782_s1 = inlined_call_operand.hbm [shape: f32[16,32], index: 1, kind: input, shape index: {}]   ;;  %s783_s2 = inlined_call_operand.vmem [shape: f32[1,32], index: 2, kind: input, shape index: {}]   ;;  %s784_s3 = inlined_call_operand.vmem [shape: f32[32,32], index: 3, kind: input, shape index: {}]   ;;  %s785_s4 = inlined_call_operand.vmem [shape: f32[1,32], index: 4, kind: input, shape index: {}]   ;;  %s786_s5 = inlined_call_operand.vmem [shape: f32[32,16], index: 5, kind: input, shape index: {}]   ;;  %s787_s6 = inlined_call_operand.vmem [shape: f32[1,16], index: 6, kind: input, shape index: {}]   ;;  %s788_s7 = inlined_call_operand.vmem [shape: f32[32,32], index: 7, kind: input, shape index: {}]   ;;  %s789_s8 = inlined_call_operand.hbm [shape: f32[1,1,128], index: 8, kind: output, shape index: {}]  }
   0x1   :  { %14 = vsyncpa [#allocation6], 0 }
   0x2   :  { %15 = vsyncpa [#allocation4], 0  ;;  %s630_s27 = smov [#allocation2]   ;;  %s631_s29 = smov [#allocation5]  }
   0x3   :  { %s22_s28 = sshll.u32 %s630_s27, 4  ;;  %s31_s30 = sshll.u32 %s631_s29, 4  ;;  %s23_s28 = int_to_ptr.vmem [resolvable:$true] %s22_s28  ;;  %s683_s30 = int_to_ptr.vmem [resolvable:$true] %s31_s30 }
   0x4   :  { %s558_s11 = scalar_lea.hbm %s781_s0, 128 }
   0x5   :  { %p559_p0 = scmp.ne.s32.totalorder %s781_s0, %s558_s11  ;;  %p562_p1 = scmp.lt.u32.totalorder %s558_s11, %s781_s0 }
   0x7   :  { %p564_p2 = pnand %p562_p1, %p559_p0 }
   0x9   :  { %567 = shalt.err (!%p564_p2)
}
   0xa   :  { %s568_s16 = scalar_lea.vmem %s23_s28, 128  ;;  %p573_p4 = scmp.lt.s32.totalorder %s23_s28, %s23_s28 }
   0xb   :  { %p569_p3 = scmp.ne.s32.totalorder %s23_s28, %s568_s16  ;;  %p574_p5 = scmp.lt.s32.totalorder %s568_s16, %s568_s16 }
   0xd   :  { %p575_p6 = por %p574_p5, %p573_p4 }
   0xf   :  { %p576_p7 = pnand %p575_p6, %p569_p3 }
  0x11   :  { %579 = shalt.err (!%p576_p7)
}
  0x12   :  { %25 = dma.hbm_to_vmem [thread:$0]  %s781_s0, 128, %s23_s28, [#allocation3]  }
  0x13   :  { %s580_s21 = scalar_lea.hbm %s782_s1, 256 }
  0x14   :  { %p581_p8 = scmp.ne.s32.totalorder %s782_s1, %s580_s21  ;;  %p584_p9 = scmp.lt.u32.totalorder %s580_s21, %s782_s1 }
  0x16   :  { %p586_p10 = pnand %p584_p9, %p581_p8 }
  0x18   :  { %589 = shalt.err (!%p586_p10)
}
  0x19   :  { %s590_s26 = scalar_lea.vmem %s683_s30, 256  ;;  %p595_p12 = scmp.lt.s32.totalorder %s683_s30, %s683_s30 }
  0x1a   :  { %p591_p11 = scmp.ne.s32.totalorder %s683_s30, %s590_s26  ;;  %p596_p13 = scmp.lt.s32.totalorder %s590_s26, %s590_s26 }
  0x1c   :  { %p597_p0 = por %p596_p13, %p595_p12 }
  0x1e   :  { %p598_p1 = pnand %p597_p0, %p591_p11 }
  0x20   :  { %601 = shalt.err (!%p598_p1)
}
  0x21   :  { %s632_s0 = smov 128   ;;  %s633_s27 = smov 8  }
  0x22   :  { %37 = dma.hbm_to_vmem [thread:$0]  %s782_s1, 256, %s683_s30, [#allocation6], %s632_s0, %s632_s0, %s633_s27  }
  0x23   :  { %624 = dma.done.wait [#allocation3], 128  }
  0x24   :  { %625 = vsyncadd [#allocation3], 4294967168 }
  0x25   :  { %626 = dma.done.wait [#allocation6], 256  }
  0x26   :  { %627 = vsyncadd [#allocation6], 4294967040  ;;  %v634_v0 = vmov 0.0|0.0   ;;  %vm635_vm0 = vmmov 0   ;;  %v636_v1 = vmov 0.0   ;;  %v57_v2 = vld [vmem:[#allocation5] sm:$0xff] }
  0x27   :  { %521 = vmatprep.subr.bf16.mxu0 %v634_v0  ;;  %485 = vmatprep.mubr.msk.f32.mxu0 %vm635_vm0, %v636_v1  ;;  %v58_v3 = vld [vmem:[#allocation5 + $0x8] sm:$0xff]  ;;  %v56_v5 = vld [vmem:[#allocation2] sm:$0xff]  ;;  %vm80_vm1 = vcmask 130048   ;;  %v61_v7 = vld [vmem:[%s784_s3 + $0x8] sm:$0xff]  ;;  %vm161_vm2 = vcmask 261120   ;;  %vm409_vm3 = vcmask 7168  }
  0x28   :  { %524 = vmatprep.subr.bf16.mxu1 %v634_v0  ;;  %496 = vmatprep.mubr.msk.f32.mxu1 %vm635_vm0, %v636_v1  ;;  %v522_v4 = vpack.c.bf16 %v58_v3, %v57_v2  ;;  %v60_v6 = vld [vmem:[%s784_s3] sm:$0xff]  ;;  %v62_v8 = vld [vmem:[%s784_s3 + $0x10] sm:$0xff]  ;;  %v63_v10 = vld [vmem:[%s784_s3 + $0x18] sm:$0xff]  ;;  %v431_v2 = vlaneseq }
  0x29   :  { %v525_v9 = vpack.c.bf16 %v61_v7, %v60_v6  ;;  %v528_v11 = vpack.c.bf16 %v63_v10, %v62_v8  ;;  %v456_v12 = vld [vmem:[%s783_s2] ss:$0 sm:$0xff]  ;;  %v66_v18 = vld [vmem:[%s786_s5 + $0x8] sm:$0xff]  ;;  %v67_v20 = vld [vmem:[%s786_s5 + $0x10] sm:$0xff] }
  0x2a   :  { %523 = vmatpush3.bf16.msra.mxu0 %v522_v4  ;;  %v65_v17 = vld [vmem:[%s786_s5] sm:$0xff]  ;;  %v68_v21 = vld [vmem:[%s786_s5 + $0x18] sm:$0xff]  ;;  %v71_v24 = vld [vmem:[%s788_s7 + $0x8] sm:$0xff]  ;;  %v432_v3 = vand.u32 127, %v431_v2 }
  0x2b   :  { %530 = vmatprep.subr.bf16.mxu0 %v634_v0  ;;  %526 = vmatpush3.bf16.msra.mxu1 %v525_v9  ;;  %v531_v19 = vpack.c.bf16 %v66_v18, %v65_v17  ;;  %v70_v22 = vld [vmem:[%s788_s7] sm:$0xff]  ;;  %v534_v23 = vpack.c.bf16 %v68_v21, %v67_v20  ;;  %v72_v26 = vld [vmem:[%s788_s7 + $0x10] sm:$0xff]  ;;  %v73_v27 = vld [vmem:[%s788_s7 + $0x18] sm:$0xff] }
  0x2c   :  { %527 = vmatprep.subr.bf16.mxu1 %v634_v0  ;;  %v537_v25 = vpack.c.bf16 %v71_v24, %v70_v22  ;;  %v540_v28 = vpack.c.bf16 %v73_v27, %v72_v26  ;;  %v458_v29 = vld [vmem:[%s785_s4] ss:$0 sm:$0xff]  ;;  %vm434_vm4 = vcmp.eq.s32.totalorder %v432_v3, 1  ;;  %vm433_vm5 = vcmp.eq.s32.totalorder %v432_v3, 0 }
  0x2d   :  { %486 = vmatmul.mubr.msk.f32.vlgmr.msra.gmra.mrb[0].mxu0 %vm80_vm1, %v56_v5  ;;  %v460_v37 = vld [vmem:[%s787_s6] ss:$0 sm:$0xff]  ;;  %s637_s6 = smov [#allocation7]  }
  0x2e   :  { %507 = vmatprep.mubr.msk.f32.mxu0 %vm635_vm0, %v636_v1  ;;  %532 = vmatpush3.bf16.msra.mxu0 %v531_v19  ;;  %s446_s9 = sshll.u32 %s637_s6, 4  ;;  %s447_s9 = int_to_ptr.vmem [resolvable:$true] %s446_s9 }
  0x2f   :  { %529 = vmatpush3.bf16.msra.mxu1 %v528_v11  ;;  %533 = vmatprep.subr.bf16.mxu0 %v634_v0  ;;  %s602_s11 = scalar_lea.vmem %s447_s9, 16  ;;  %s606_s12 = scalar_lea.vmem %s447_s9, 32 }
  0x30   :  { %536 = vmatprep.subr.bf16.mxu1 %v634_v0  ;;  %p603_p2 = scmp.ne.s32.totalorder %s447_s9, %s602_s11  ;;  %p607_p3 = scmp.lt.s32.totalorder %s447_s9, %s447_s9 }
  0x31   :  { %p608_p4 = scmp.lt.s32.totalorder %s606_s12, %s602_s11 }
  0x32   :  { %535 = vmatpush3.bf16.msra.mxu0 %v534_v23 }
  0x33   :  { %p609_p5 = por %p608_p4, %p607_p3 }
  0x35   :  { %p610_p6 = pnand %p609_p5, %p603_p2 }
 0x100   :  { %v150_v13 = vpop.f32.mrb[0].mxu0 }
 0x101   :  { %v151_v14 = vadd.f32 %v456_v12, %v150_v13  ;;  %v487_v15 = vpop.f32.mrb[1].mxu0 }
 0x103   :  { %554 = vtanh.f32 %v151_v14 }
 0x10d   :  { %v555_v16 = vpop.eup %554 }
 0x10e   :  { %497 = vmatmul.mubr.msk.f32.vlgmr.msra.gmra.mrb[0].mxu1 %vm161_vm2, %v555_v16  ;;  %v315_v36 = vmul.f32 %v555_v16, %v555_v16 }
 0x10f   :  { %518 = vmatprep.mubr.msk.f32.mxu1 %vm635_vm0, %v636_v1  ;;  %538 = vmatpush3.bf16.msra.mxu1 %v537_v25 }
 0x110   :  { %539 = vmatprep.subr.bf16.mxu1 %v634_v0  ;;  %v316_v41 = vsub.f32 1.0, %v315_v36 }
 0x113   :  { %541 = vmatpush3.bf16.msra.mxu1 %v540_v28 }
 0x1e1   :  { %v231_v30 = vpop.f32.mrb[0].mxu1 }
 0x1e2   :  { %v232_v31 = vadd.f32 %v458_v29, %v231_v30  ;;  %v498_v32 = vpop.f32.mrb[1].mxu1 }
 0x1e4   :  { %556 = vtanh.f32 %v232_v31 }
 0x1ee   :  { %v557_v33 = vpop.eup %556 }
 0x1ef   :  { %v317_v34 = vmul.f32 %v557_v33, %v557_v33  ;;  %508 = vmatmul.mubr.msk.f32.vlgmr.msra.gmra.mrb[2].mxu0 %vm161_vm2, %v557_v33 }
 0x1f1   :  { %v318_v35 = vsub.f32 1.0, %v317_v34 }
 0x1f3   :  { %519 = vmatmul.mubr.msk.f32.vlgmr.msra.gmra.mrb[2].mxu1 %vm161_vm2, %v318_v35 }
 0x2c2   :  { %v311_v38 = vpop.f32.mrb[2].mxu0 }
 0x2c3   :  { %v509_v39 = vpop.f32.mrb[3].mxu0  ;;  %v312_v40 = vadd.f32 %v460_v37, %v311_v38 }
 0x2c5   :  { %v396_v45 = vmul.f32 %v312_v40, %v312_v40 }
 0x2c6   :  { %v388_v42 = vpop.f32.mrb[2].mxu1 }
 0x2c7   :  { %v392_v43 = vmul.f32 %v388_v42, %v316_v41  ;;  %v520_v44 = vpop.f32.mrb[3].mxu1  ;;  %v397_v47 = vsel %vm80_vm1, %v396_v45, 0.0 }
 0x2c9   :  { %v393_v46 = vsel %vm161_vm2, %v392_v43, 0.0 }
 0x2ca   :  { %394 = vadd.xlane.f32.xlu0 %v393_v46 }
 0x2ce   :  { %398 = vadd.xlane.f32.xlu0 %v397_v47 }
 0x357   :  { %v395_v48 = vpop.xlane.xlu0 %394 }
 0x358   :  { %v421_v51 = vsel %vm409_vm3, %v395_v48, 0.0 }
 0x35b   :  { %v399_v49 = vpop.xlane.xlu0 %398 }
 0x35c   :  { %v410_v50 = vsel %vm409_vm3, %v399_v49, 0.0 }
 0x35d   :  { %411 = vadd.xlane.f32.xlu1 %v410_v50 }
 0x361   :  { %422 = vadd.xlane.f32.xlu1 %v421_v51 }
 0x3ea   :  { %v412_v52 = vpop.xlane.xlu1 %411 }
 0x3eb   :  { %v413_v53 = vrot.slane %v412_v52, 4 }
 0x3ed   :  { %v414_v54 = vadd.f32 %v413_v53, %v412_v52 }
 0x3ee   :  { %v423_v55 = vpop.xlane.xlu1 %422 }
 0x3ef   :  { %v415_v56 = vrot.slane %v414_v54, 2  ;;  %v424_v57 = vrot.slane %v423_v55, 4 }
 0x3f1   :  { %v425_v58 = vadd.f32 %v424_v57, %v423_v55  ;;  %v416_v59 = vadd.f32 %v415_v56, %v414_v54 }
 0x3f3   :  { %v426_v60 = vrot.slane %v425_v58, 2  ;;  %v417_v61 = vrot.slane %v416_v59, 1 }
 0x3f5   :  { %v427_v62 = vadd.f32 %v426_v60, %v425_v58  ;;  %v418_v63 = vadd.f32 %v417_v61, %v416_v59 }
 0x3f7   :  { %542 = vpush %v418_v63  ;;  %v428_v0 = vrot.slane %v427_v62, 1 }
 0x3f9   :  { %v429_v1 = vadd.f32 %v428_v0, %v427_v62 }
 0x3fb   :  { %544 = vpush %v429_v1 }
 0x428   :  { %s543_s4 = spop %542 }
 0x429   :  { %v437_v5 = vstv %s543_s4 }
 0x42c   :  { %s545_s10 = spop %544 }
 0x42d   :  { %v435_v4 = vstv %s545_s10 }
 0x42e   :  { %v436_v6 = vsel %vm434_vm4, %v435_v4, 0.0 }
 0x42f   :  { %v438_v7 = vsel %vm433_vm5, %v437_v5, %v436_v6 }
 0x430   :  { %439 = vst [vmem:[#allocation7] sm:$0x1] %v438_v7 }
 0x431   :  { %613 = shalt.err (!%p610_p6)
}
 0x432   :  { %s614_s15 = scalar_lea.hbm %s789_s8, 16 }
 0x433   :  { %p615_p7 = scmp.ne.s32.totalorder %s789_s8, %s614_s15  ;;  %p618_p8 = scmp.lt.u32.totalorder %s614_s15, %s789_s8 }
 0x435   :  { %p620_p9 = pnand %p618_p8, %p615_p7 }
 0x437   :  { %623 = shalt.err (!%p620_p9)
}
 0x438   :  { %449 = dma.vmem_to_hbm [thread:$0]  %s447_s9, 16, %s789_s8, [#allocation4]  }
 0x439   :  { %628 = dma.done.wait [#allocation4], 16  }
 0x43a   :  { %629 = vsyncadd [#allocation4], 4294967280 }
 0x43b   :  { %453 = vsyncpa [#allocation3], 1 }
 0x43c   :  { %454 = vsyncpa [#allocation6], 1 }
 0x43d   :  { %455 = vsyncpa [#allocation4], 1 }

</bundles_post_ra>
